<compile_context>
chip_gen: v6e
topology: v6e:2x2x1
jax: 0.10.0
libtpu: 0.0.40
codegen_flags: <defaults>
</compile_context>

<pallas_src>
import functools

import jax
import jax.numpy as jnp
from jax.experimental import pallas as pl
from jax.experimental.pallas import tpu as pltpu


# ---------------------------------------------------------------------------
# In-kernel helpers (operate on lane-dense (C, H*W) activations).
# ---------------------------------------------------------------------------
def _shift_lanes(x, d):
    """y[:, i] = x[:, i + d] (static d, zero fill at the ends)."""
    if d == 0:
        return x
    c, length = x.shape
    pad = jnp.zeros((c, abs(d)), x.dtype)
    if d > 0:
        return jnp.concatenate([x[:, d:], pad], axis=-1)
    return jnp.concatenate([pad, x[:, :length + d]], axis=-1)


def _conv3x3_relu(x_flat, w2d, b_col, masks, row_w):
    """3x3 'same' conv + bias + ReLU as one im2col MXU matmul.

    x_flat: (Cin, L) f32, L = rows * row_w (row-major flattened spatial)
    w2d:    (Cout, 9*Cin) bf16, K ordered (kh, kw, cin)
    b_col:  (Cout, 1) f32
    masks:  (9, L) f32 0/1 tap-validity masks (implements pad=1 boundary)
    """
    pieces = []
    for kh in range(3):
        for kw in range(3):
            t = kh * 3 + kw
            d = (kh - 1) * row_w + (kw - 1)
            pieces.append(_shift_lanes(x_flat, d) * masks[t:t + 1, :])
    patches = jnp.concatenate(pieces, axis=0)                 # (9*Cin, L) f32
    acc = jnp.dot(w2d, patches.astype(jnp.bfloat16),
                  preferred_element_type=jnp.float32)          # (Cout, L) f32
    return jnp.maximum(acc + b_col, 0.0)


def _fused_kernel(label_ref, x_ref, w1_ref, b1_ref, w2_ref, b2_ref,
                  m1_ref, m2_ref, sel_ref, o_ref, *, W, LW):
    # label_ref: (1, Cl, LH*LW)   x_ref: (1, Ci, H*W)
    # w1_ref: (Cf, 9*Cl) bf16     w2_ref: (Cf, 9*(Cf+Ci)) bf16
    # b1_ref/b2_ref: (Cf, 1)      m1_ref: (9, LH*LW)   m2_ref: (9, H*W)
    # sel_ref: (LH*LW, H*W) nearest-resize one-hot     o_ref: (1, Cf, H*W)
    lab = label_ref[0]                                         # (Cl, LH*LW)
    x = x_ref[0]                                               # (Ci, H*W)

    # conv1 + relu on the label (stays in vregs/VMEM).
    y1 = _conv3x3_relu(lab, w1_ref[...], b1_ref[...], m1_ref[...], LW)

    # nearest-neighbour resize to (H, W): one-hot selection matmul.
    y1 = jnp.dot(y1, sel_ref[...], preferred_element_type=jnp.float32)

    # channel concat (label features first, matching torch.cat) + conv2 + relu.
    cat = jnp.concatenate([y1, x], axis=0)                     # (Cf+Ci, H*W)
    out = _conv3x3_relu(cat, w2_ref[...], b2_ref[...], m2_ref[...], W)

    o_ref[0] = out.astype(o_ref.dtype)                         # lane-dense store


# ---------------------------------------------------------------------------
# Wrapper-side constants (static-shape only -> constant folded under jit).
# ---------------------------------------------------------------------------
def _tap_masks(h, w):
    """(9, h*w) 0/1 masks: validity of each 3x3 tap under pad=1."""
    hw = h * w
    hi = jnp.arange(hw, dtype=jnp.int32) // w
    wi = jnp.arange(hw, dtype=jnp.int32) % w
    rows = []
    for kh in range(3):
        for kw in range(3):
            dh, dw = kh - 1, kw - 1
            ok = ((hi + dh >= 0) & (hi + dh < h) &
                  (wi + dw >= 0) & (wi + dw < w))
            rows.append(ok)
    return jnp.stack(rows, axis=0).astype(jnp.float32)


def _resize_onehot(lh, lw, h, w):
    """(lh*lw, h*w) one-hot with PyTorch nearest semantics src=floor(i*in/out)."""
    src_h = (jnp.arange(h, dtype=jnp.int32) * lh) // h
    src_w = (jnp.arange(w, dtype=jnp.int32) * lw) // w
    src_flat = (src_h[:, None] * lw + src_w[None, :]).reshape(1, h * w)
    rows = jnp.arange(lh * lw, dtype=jnp.int32)[:, None]
    return (rows == src_flat).astype(jnp.float32)


def _w_to_2d(w_oihw):
    """(Cout, Cin, 3, 3) -> (Cout, 9*Cin), K ordered (kh, kw, cin)."""
    cout, cin, kh, kw = w_oihw.shape
    return jnp.transpose(w_oihw, (0, 2, 3, 1)).reshape(cout, kh * kw * cin)


# ---------------------------------------------------------------------------
# Public forward (NCHW in / NCHW out, matching the PyTorch module).
# ---------------------------------------------------------------------------
def label_combination_forward(inputs_nchw, label_nchw, params):
    n, ci, h, w = inputs_nchw.shape
    _, cl, lh, lw = label_nchw.shape
    cf = params["w1"].shape[0]
    hw, lhw = h * w, lh * lw

    # NCHW -> (N, C, H*W): a pure reshape, no transpose / extra HBM pass.
    x_flat = inputs_nchw.reshape(n, ci, hw)
    lab_flat = label_nchw.reshape(n, cl, lhw)

    w1_2d = _w_to_2d(params["w1"]).astype(jnp.bfloat16)        # (cf, 9*cl)
    w2_2d = _w_to_2d(params["w2"]).astype(jnp.bfloat16)        # (cf, 9*(cf+ci))
    b1c = params["b1"].reshape(cf, 1).astype(jnp.float32)
    b2c = params["b2"].reshape(cf, 1).astype(jnp.float32)

    mask1 = _tap_masks(lh, lw)                                 # (9, lhw)
    mask2 = _tap_masks(h, w)                                   # (9, hw)
    sel = _resize_onehot(lh, lw, h, w)                         # (lhw, hw)

    kernel = functools.partial(_fused_kernel, W=w, LW=lw)

    out_flat = pl.pallas_call(
        kernel,
        out_shape=jax.ShapeDtypeStruct((n, cf, hw), jnp.float32),
        grid_spec=pltpu.PrefetchScalarGridSpec(
            num_scalar_prefetch=0,
            grid=(n,),
            in_specs=[
                pl.BlockSpec((1, cl, lhw), lambda b: (b, 0, 0)),
                pl.BlockSpec((1, ci, hw), lambda b: (b, 0, 0)),
                pl.BlockSpec((cf, 9 * cl), lambda b: (0, 0)),
                pl.BlockSpec((cf, 1), lambda b: (0, 0)),
                pl.BlockSpec((cf, 9 * (cf + ci)), lambda b: (0, 0)),
                pl.BlockSpec((cf, 1), lambda b: (0, 0)),
                pl.BlockSpec((9, lhw), lambda b: (0, 0)),
                pl.BlockSpec((9, hw), lambda b: (0, 0)),
                pl.BlockSpec((lhw, hw), lambda b: (0, 0)),
            ],
            out_specs=pl.BlockSpec((1, cf, hw), lambda b: (b, 0, 0)),
        ),
        compiler_params=pltpu.CompilerParams(
            dimension_semantics=("parallel",)),
    )(lab_flat, x_flat, w1_2d, b1c, w2_2d, b2c, mask1, mask2, sel)

    return out_flat.reshape(n, cf, h, w)


# ---------------------------------------------------------------------------
# Pure-JAX reference (f32 lax conv) and parameter init for the self-test.
# ---------------------------------------------------------------------------
def _reference_forward(inputs_nchw, label_nchw, params):
    def conv(x, w, b):
        y = jax.lax.conv_general_dilated(
            x, w, window_strides=(1, 1), padding="SAME",
            dimension_numbers=("NCHW", "OIHW", "NCHW"))
        return jax.nn.relu(y + b.reshape(1, -1, 1, 1))

    y1 = conv(label_nchw, params["w1"], params["b1"])
    _, _, h, w = inputs_nchw.shape
    ih, iw = y1.shape[2], y1.shape[3]
    hi = (jnp.arange(h) * ih) // h
    wi = (jnp.arange(w) * iw) // w
    y1 = y1[:, :, hi][:, :, :, wi]
    cat = jnp.concatenate([y1, inputs_nchw], axis=1)
    return conv(cat, params["w2"], params["b2"])


def init_params(key, input_channels, label_channels, feature_channels, k=3):
    k1, k2, k3, k4 = jax.random.split(key, 4)
    scale1 = 1.0 / jnp.sqrt(label_channels * k * k)
    scale2 = 1.0 / jnp.sqrt((feature_channels + input_channels) * k * k)
    return {
        "w1": jax.random.uniform(k1, (feature_channels, label_channels, k, k),
                                 jnp.float32, -scale1, scale1),
        "b1": jax.random.uniform(k2, (feature_channels,), jnp.float32,
                                 -scale1, scale1),
        "w2": jax.random.uniform(
            k3, (feature_channels, feature_channels + input_channels, k, k),
            jnp.float32, -scale2, scale2),
        "b2": jax.random.uniform(k4, (feature_channels,), jnp.float32,
                                 -scale2, scale2),
    }


if __name__ == "__main__":
    key = jax.random.PRNGKey(0)
    k_in, k_lab, k_par = jax.random.split(key, 3)

    batch = 2
    input_channels = 4
    label_channels = 3
    feature_channels = 8
    H = W = 16
    LH = LW = 8   # label at a different spatial size to exercise the resize

    inputs = jax.random.normal(k_in, (batch, input_channels, H, W), jnp.float32)
    label = jax.random.normal(k_lab, (batch, label_channels, LH, LW), jnp.float32)
    params = init_params(k_par, input_channels, label_channels, feature_channels)

    out = jax.jit(label_combination_forward)(inputs, label, params)
    out = jax.block_until_ready(out)

    ref = _reference_forward(inputs, label, params)
    assert out.shape == (batch, feature_channels, H, W)
    # bf16 MXU operands (f32 accumulation) -> slightly looser tolerance than f32.
    assert jnp.allclose(out, ref, atol=3e-2, rtol=3e-2), "mismatch vs reference"

    print("KERNEL_OK")
</pallas_src>

<mosaic_0001>
module attributes {stable_mosaic.version = 11 : i64} {
  func.func @_fused_kernel(%arg0: i32, %arg1: memref<1x3x64xf32, #tpu.memory_space<vmem>>, %arg2: memref<1x4x256xf32, #tpu.memory_space<vmem>>, %arg3: memref<8x27xbf16, #tpu.memory_space<vmem>>, %arg4: memref<8x1xf32, #tpu.memory_space<vmem>>, %arg5: memref<8x108xbf16, #tpu.memory_space<vmem>>, %arg6: memref<8x1xf32, #tpu.memory_space<vmem>>, %arg7: memref<9x64xf32, #tpu.memory_space<vmem>>, %arg8: memref<9x256xf32, #tpu.memory_space<vmem>>, %arg9: memref<64x256xf32, #tpu.memory_space<vmem>>, %arg10: memref<1x8x256xf32, #tpu.memory_space<vmem>>) attributes {dimension_semantics = [#tpu.dimension_semantics<parallel>], iteration_bounds = array<i64: 2>, scalar_prefetch = 0 : i64, scratch_operands = 0 : i64, tpu.core_type = #tpu.core_type<tc>, window_params = [{transform_indices = @transform_0, window_bounds = array<i64: 1, 3, 64>}, {transform_indices = @transform_1, window_bounds = array<i64: 1, 4, 256>}, {pipeline_mode = #tpu.pipeline_mode<synchronous>, transform_indices = @transform_2, window_bounds = array<i64: 8, 27>}, {pipeline_mode = #tpu.pipeline_mode<synchronous>, transform_indices = @transform_3, window_bounds = array<i64: 8, 1>}, {pipeline_mode = #tpu.pipeline_mode<synchronous>, transform_indices = @transform_4, window_bounds = array<i64: 8, 108>}, {pipeline_mode = #tpu.pipeline_mode<synchronous>, transform_indices = @transform_5, window_bounds = array<i64: 8, 1>}, {pipeline_mode = #tpu.pipeline_mode<synchronous>, transform_indices = @transform_6, window_bounds = array<i64: 9, 64>}, {pipeline_mode = #tpu.pipeline_mode<synchronous>, transform_indices = @transform_7, window_bounds = array<i64: 9, 256>}, {pipeline_mode = #tpu.pipeline_mode<synchronous>, transform_indices = @transform_8, window_bounds = array<i64: 64, 256>}, {transform_indices = @transform_9, window_bounds = array<i64: 1, 8, 256>}]} {
    %c0 = arith.constant 0 : index
    %c0_0 = arith.constant 0 : index
    %c0_1 = arith.constant 0 : index
    %0 = vector.load %arg1[%c0, %c0_0, %c0_1] : memref<1x3x64xf32, #tpu.memory_space<vmem>>, vector<1x3x64xf32>
    %1 = vector.shape_cast %0 : vector<1x3x64xf32> to vector<3x64xf32>
    %c0_2 = arith.constant 0 : index
    %c0_3 = arith.constant 0 : index
    %c0_4 = arith.constant 0 : index
    %2 = vector.load %arg2[%c0_2, %c0_3, %c0_4] : memref<1x4x256xf32, #tpu.memory_space<vmem>>, vector<1x4x256xf32>
    %3 = vector.shape_cast %2 : vector<1x4x256xf32> to vector<4x256xf32>
    %c0_5 = arith.constant 0 : index
    %c0_6 = arith.constant 0 : index
    %4 = vector.load %arg3[%c0_5, %c0_6] : memref<8x27xbf16, #tpu.memory_space<vmem>>, vector<8x27xbf16>
    %c0_7 = arith.constant 0 : index
    %c0_8 = arith.constant 0 : index
    %5 = vector.load %arg4[%c0_7, %c0_8] : memref<8x1xf32, #tpu.memory_space<vmem>>, vector<8x1xf32>
    %c0_9 = arith.constant 0 : index
    %c0_10 = arith.constant 0 : index
    %6 = vector.load %arg7[%c0_9, %c0_10] : memref<9x64xf32, #tpu.memory_space<vmem>>, vector<9x64xf32>
    %cst = arith.constant 0.000000e+00 : f32
    %7 = vector.broadcast %cst : f32 to vector<3x9xf32>
    %8 = vector.extract_strided_slice %1 {offsets = [0, 0], sizes = [3, 55], strides = [1, 1]} : vector<3x64xf32> to vector<3x55xf32>
    %9 = tpu.concatenate %7, %8 in 1 : vector<3x9xf32>, vector<3x55xf32> -> vector<3x64xf32>
    %10 = vector.extract_strided_slice %6 {offsets = [0, 0], sizes = [1, 64], strides = [1, 1]} : vector<9x64xf32> to vector<1x64xf32>
    %11 = vector.broadcast %10 : vector<1x64xf32> to vector<3x64xf32>
    %12 = arith.mulf %9, %11 : vector<3x64xf32>
    %cst_11 = arith.constant 0.000000e+00 : f32
    %13 = vector.broadcast %cst_11 : f32 to vector<3x8xf32>
    %14 = vector.extract_strided_slice %1 {offsets = [0, 0], sizes = [3, 56], strides = [1, 1]} : vector<3x64xf32> to vector<3x56xf32>
    %15 = tpu.concatenate %13, %14 in 1 : vector<3x8xf32>, vector<3x56xf32> -> vector<3x64xf32>
    %16 = vector.extract_strided_slice %6 {offsets = [1, 0], sizes = [1, 64], strides = [1, 1]} : vector<9x64xf32> to vector<1x64xf32>
    %17 = vector.broadcast %16 : vector<1x64xf32> to vector<3x64xf32>
    %18 = arith.mulf %15, %17 : vector<3x64xf32>
    %cst_12 = arith.constant 0.000000e+00 : f32
    %19 = vector.broadcast %cst_12 : f32 to vector<3x7xf32>
    %20 = vector.extract_strided_slice %1 {offsets = [0, 0], sizes = [3, 57], strides = [1, 1]} : vector<3x64xf32> to vector<3x57xf32>
    %21 = tpu.concatenate %19, %20 in 1 : vector<3x7xf32>, vector<3x57xf32> -> vector<3x64xf32>
    %22 = vector.extract_strided_slice %6 {offsets = [2, 0], sizes = [1, 64], strides = [1, 1]} : vector<9x64xf32> to vector<1x64xf32>
    %23 = vector.broadcast %22 : vector<1x64xf32> to vector<3x64xf32>
    %24 = arith.mulf %21, %23 : vector<3x64xf32>
    %cst_13 = arith.constant 0.000000e+00 : f32
    %25 = vector.broadcast %cst_13 : f32 to vector<3x1xf32>
    %26 = vector.extract_strided_slice %1 {offsets = [0, 0], sizes = [3, 63], strides = [1, 1]} : vector<3x64xf32> to vector<3x63xf32>
    %27 = tpu.concatenate %25, %26 in 1 : vector<3x1xf32>, vector<3x63xf32> -> vector<3x64xf32>
    %28 = vector.extract_strided_slice %6 {offsets = [3, 0], sizes = [1, 64], strides = [1, 1]} : vector<9x64xf32> to vector<1x64xf32>
    %29 = vector.broadcast %28 : vector<1x64xf32> to vector<3x64xf32>
    %30 = arith.mulf %27, %29 : vector<3x64xf32>
    %31 = vector.extract_strided_slice %6 {offsets = [4, 0], sizes = [1, 64], strides = [1, 1]} : vector<9x64xf32> to vector<1x64xf32>
    %32 = vector.broadcast %31 : vector<1x64xf32> to vector<3x64xf32>
    %33 = arith.mulf %1, %32 : vector<3x64xf32>
    %cst_14 = arith.constant 0.000000e+00 : f32
    %34 = vector.broadcast %cst_14 : f32 to vector<3x1xf32>
    %35 = vector.extract_strided_slice %1 {offsets = [0, 1], sizes = [3, 63], strides = [1, 1]} : vector<3x64xf32> to vector<3x63xf32>
    %36 = tpu.concatenate %35, %34 in 1 : vector<3x63xf32>, vector<3x1xf32> -> vector<3x64xf32>
    %37 = vector.extract_strided_slice %6 {offsets = [5, 0], sizes = [1, 64], strides = [1, 1]} : vector<9x64xf32> to vector<1x64xf32>
    %38 = vector.broadcast %37 : vector<1x64xf32> to vector<3x64xf32>
    %39 = arith.mulf %36, %38 : vector<3x64xf32>
    %cst_15 = arith.constant 0.000000e+00 : f32
    %40 = vector.broadcast %cst_15 : f32 to vector<3x7xf32>
    %41 = vector.extract_strided_slice %1 {offsets = [0, 7], sizes = [3, 57], strides = [1, 1]} : vector<3x64xf32> to vector<3x57xf32>
    %42 = tpu.concatenate %41, %40 in 1 : vector<3x57xf32>, vector<3x7xf32> -> vector<3x64xf32>
    %43 = vector.extract_strided_slice %6 {offsets = [6, 0], sizes = [1, 64], strides = [1, 1]} : vector<9x64xf32> to vector<1x64xf32>
    %44 = vector.broadcast %43 : vector<1x64xf32> to vector<3x64xf32>
    %45 = arith.mulf %42, %44 : vector<3x64xf32>
    %cst_16 = arith.constant 0.000000e+00 : f32
    %46 = vector.broadcast %cst_16 : f32 to vector<3x8xf32>
    %47 = vector.extract_strided_slice %1 {offsets = [0, 8], sizes = [3, 56], strides = [1, 1]} : vector<3x64xf32> to vector<3x56xf32>
    %48 = tpu.concatenate %47, %46 in 1 : vector<3x56xf32>, vector<3x8xf32> -> vector<3x64xf32>
    %49 = vector.extract_strided_slice %6 {offsets = [7, 0], sizes = [1, 64], strides = [1, 1]} : vector<9x64xf32> to vector<1x64xf32>
    %50 = vector.broadcast %49 : vector<1x64xf32> to vector<3x64xf32>
    %51 = arith.mulf %48, %50 : vector<3x64xf32>
    %cst_17 = arith.constant 0.000000e+00 : f32
    %52 = vector.broadcast %cst_17 : f32 to vector<3x9xf32>
    %53 = vector.extract_strided_slice %1 {offsets = [0, 9], sizes = [3, 55], strides = [1, 1]} : vector<3x64xf32> to vector<3x55xf32>
    %54 = tpu.concatenate %53, %52 in 1 : vector<3x55xf32>, vector<3x9xf32> -> vector<3x64xf32>
    %55 = vector.extract_strided_slice %6 {offsets = [8, 0], sizes = [1, 64], strides = [1, 1]} : vector<9x64xf32> to vector<1x64xf32>
    %56 = vector.broadcast %55 : vector<1x64xf32> to vector<3x64xf32>
    %57 = arith.mulf %54, %56 : vector<3x64xf32>
    %58 = tpu.concatenate %12, %18, %24, %30, %33, %39, %45, %51, %57 in 0 : vector<3x64xf32>, vector<3x64xf32>, vector<3x64xf32>, vector<3x64xf32>, vector<3x64xf32>, vector<3x64xf32>, vector<3x64xf32>, vector<3x64xf32>, vector<3x64xf32> -> vector<27x64xf32>
    %59 = arith.truncf %58 : vector<27x64xf32> to vector<27x64xbf16>
    %cst_18 = arith.constant dense<0.000000e+00> : vector<8x64xf32>
    %60 = tpu.matmul %4, %59, %cst_18 {dimension_numbers = #tpu.dot_dimension_numbers<[1], [0], [0], [1], [0, 0, 1, 1], [], []>} : vector<8x27xbf16>, vector<27x64xbf16>, vector<8x64xf32> -> vector<8x64xf32>
    %61 = vector.broadcast %5 : vector<8x1xf32> to vector<8x64xf32>
    %62 = arith.addf %60, %61 : vector<8x64xf32>
    %cst_19 = arith.constant 0.000000e+00 : f32
    %63 = vector.broadcast %cst_19 : f32 to vector<8x64xf32>
    %64 = arith.maximumf %62, %63 : vector<8x64xf32>
    %c0_20 = arith.constant 0 : index
    %c0_21 = arith.constant 0 : index
    %65 = vector.load %arg9[%c0_20, %c0_21] : memref<64x256xf32, #tpu.memory_space<vmem>>, vector<64x256xf32>
    %cst_22 = arith.constant dense<0.000000e+00> : vector<8x256xf32>
    %66 = tpu.matmul %64, %65, %cst_22 {dimension_numbers = #tpu.dot_dimension_numbers<[1], [0], [0], [1], [0, 0, 1, 1], [], []>} : vector<8x64xf32>, vector<64x256xf32>, vector<8x256xf32> -> vector<8x256xf32>
    %67 = tpu.concatenate %66, %3 in 0 : vector<8x256xf32>, vector<4x256xf32> -> vector<12x256xf32>
    %c0_23 = arith.constant 0 : index
    %c0_24 = arith.constant 0 : index
    %68 = vector.load %arg5[%c0_23, %c0_24] : memref<8x108xbf16, #tpu.memory_space<vmem>>, vector<8x108xbf16>
    %c0_25 = arith.constant 0 : index
    %c0_26 = arith.constant 0 : index
    %69 = vector.load %arg6[%c0_25, %c0_26] : memref<8x1xf32, #tpu.memory_space<vmem>>, vector<8x1xf32>
    %c0_27 = arith.constant 0 : index
    %c0_28 = arith.constant 0 : index
    %70 = vector.load %arg8[%c0_27, %c0_28] : memref<9x256xf32, #tpu.memory_space<vmem>>, vector<9x256xf32>
    %cst_29 = arith.constant 0.000000e+00 : f32
    %71 = vector.broadcast %cst_29 : f32 to vector<12x17xf32>
    %72 = vector.extract_strided_slice %67 {offsets = [0, 0], sizes = [12, 239], strides = [1, 1]} : vector<12x256xf32> to vector<12x239xf32>
    %73 = tpu.concatenate %71, %72 in 1 : vector<12x17xf32>, vector<12x239xf32> -> vector<12x256xf32>
    %74 = vector.extract_strided_slice %70 {offsets = [0, 0], sizes = [1, 256], strides = [1, 1]} : vector<9x256xf32> to vector<1x256xf32>
    %75 = vector.broadcast %74 : vector<1x256xf32> to vector<12x256xf32>
    %76 = arith.mulf %73, %75 : vector<12x256xf32>
    %cst_30 = arith.constant 0.000000e+00 : f32
    %77 = vector.broadcast %cst_30 : f32 to vector<12x16xf32>
    %78 = vector.extract_strided_slice %67 {offsets = [0, 0], sizes = [12, 240], strides = [1, 1]} : vector<12x256xf32> to vector<12x240xf32>
    %79 = tpu.concatenate %77, %78 in 1 : vector<12x16xf32>, vector<12x240xf32> -> vector<12x256xf32>
    %80 = vector.extract_strided_slice %70 {offsets = [1, 0], sizes = [1, 256], strides = [1, 1]} : vector<9x256xf32> to vector<1x256xf32>
    %81 = vector.broadcast %80 : vector<1x256xf32> to vector<12x256xf32>
    %82 = arith.mulf %79, %81 : vector<12x256xf32>
    %cst_31 = arith.constant 0.000000e+00 : f32
    %83 = vector.broadcast %cst_31 : f32 to vector<12x15xf32>
    %84 = vector.extract_strided_slice %67 {offsets = [0, 0], sizes = [12, 241], strides = [1, 1]} : vector<12x256xf32> to vector<12x241xf32>
    %85 = tpu.concatenate %83, %84 in 1 : vector<12x15xf32>, vector<12x241xf32> -> vector<12x256xf32>
    %86 = vector.extract_strided_slice %70 {offsets = [2, 0], sizes = [1, 256], strides = [1, 1]} : vector<9x256xf32> to vector<1x256xf32>
    %87 = vector.broadcast %86 : vector<1x256xf32> to vector<12x256xf32>
    %88 = arith.mulf %85, %87 : vector<12x256xf32>
    %cst_32 = arith.constant 0.000000e+00 : f32
    %89 = vector.broadcast %cst_32 : f32 to vector<12x1xf32>
    %90 = vector.extract_strided_slice %67 {offsets = [0, 0], sizes = [12, 255], strides = [1, 1]} : vector<12x256xf32> to vector<12x255xf32>
    %91 = tpu.concatenate %89, %90 in 1 : vector<12x1xf32>, vector<12x255xf32> -> vector<12x256xf32>
    %92 = vector.extract_strided_slice %70 {offsets = [3, 0], sizes = [1, 256], strides = [1, 1]} : vector<9x256xf32> to vector<1x256xf32>
    %93 = vector.broadcast %92 : vector<1x256xf32> to vector<12x256xf32>
    %94 = arith.mulf %91, %93 : vector<12x256xf32>
    %95 = vector.extract_strided_slice %70 {offsets = [4, 0], sizes = [1, 256], strides = [1, 1]} : vector<9x256xf32> to vector<1x256xf32>
    %96 = vector.broadcast %95 : vector<1x256xf32> to vector<12x256xf32>
    %97 = arith.mulf %67, %96 : vector<12x256xf32>
    %cst_33 = arith.constant 0.000000e+00 : f32
    %98 = vector.broadcast %cst_33 : f32 to vector<12x1xf32>
    %99 = vector.extract_strided_slice %67 {offsets = [0, 1], sizes = [12, 255], strides = [1, 1]} : vector<12x256xf32> to vector<12x255xf32>
    %100 = tpu.concatenate %99, %98 in 1 : vector<12x255xf32>, vector<12x1xf32> -> vector<12x256xf32>
    %101 = vector.extract_strided_slice %70 {offsets = [5, 0], sizes = [1, 256], strides = [1, 1]} : vector<9x256xf32> to vector<1x256xf32>
    %102 = vector.broadcast %101 : vector<1x256xf32> to vector<12x256xf32>
    %103 = arith.mulf %100, %102 : vector<12x256xf32>
    %cst_34 = arith.constant 0.000000e+00 : f32
    %104 = vector.broadcast %cst_34 : f32 to vector<12x15xf32>
    %105 = vector.extract_strided_slice %67 {offsets = [0, 15], sizes = [12, 241], strides = [1, 1]} : vector<12x256xf32> to vector<12x241xf32>
    %106 = tpu.concatenate %105, %104 in 1 : vector<12x241xf32>, vector<12x15xf32> -> vector<12x256xf32>
    %107 = vector.extract_strided_slice %70 {offsets = [6, 0], sizes = [1, 256], strides = [1, 1]} : vector<9x256xf32> to vector<1x256xf32>
    %108 = vector.broadcast %107 : vector<1x256xf32> to vector<12x256xf32>
    %109 = arith.mulf %106, %108 : vector<12x256xf32>
    %cst_35 = arith.constant 0.000000e+00 : f32
    %110 = vector.broadcast %cst_35 : f32 to vector<12x16xf32>
    %111 = vector.extract_strided_slice %67 {offsets = [0, 16], sizes = [12, 240], strides = [1, 1]} : vector<12x256xf32> to vector<12x240xf32>
    %112 = tpu.concatenate %111, %110 in 1 : vector<12x240xf32>, vector<12x16xf32> -> vector<12x256xf32>
    %113 = vector.extract_strided_slice %70 {offsets = [7, 0], sizes = [1, 256], strides = [1, 1]} : vector<9x256xf32> to vector<1x256xf32>
    %114 = vector.broadcast %113 : vector<1x256xf32> to vector<12x256xf32>
    %115 = arith.mulf %112, %114 : vector<12x256xf32>
    %cst_36 = arith.constant 0.000000e+00 : f32
    %116 = vector.broadcast %cst_36 : f32 to vector<12x17xf32>
    %117 = vector.extract_strided_slice %67 {offsets = [0, 17], sizes = [12, 239], strides = [1, 1]} : vector<12x256xf32> to vector<12x239xf32>
    %118 = tpu.concatenate %117, %116 in 1 : vector<12x239xf32>, vector<12x17xf32> -> vector<12x256xf32>
    %119 = vector.extract_strided_slice %70 {offsets = [8, 0], sizes = [1, 256], strides = [1, 1]} : vector<9x256xf32> to vector<1x256xf32>
    %120 = vector.broadcast %119 : vector<1x256xf32> to vector<12x256xf32>
    %121 = arith.mulf %118, %120 : vector<12x256xf32>
    %122 = tpu.concatenate %76, %82, %88, %94, %97, %103, %109, %115, %121 in 0 : vector<12x256xf32>, vector<12x256xf32>, vector<12x256xf32>, vector<12x256xf32>, vector<12x256xf32>, vector<12x256xf32>, vector<12x256xf32>, vector<12x256xf32>, vector<12x256xf32> -> vector<108x256xf32>
    %123 = arith.truncf %122 : vector<108x256xf32> to vector<108x256xbf16>
    %cst_37 = arith.constant dense<0.000000e+00> : vector<8x256xf32>
    %124 = tpu.matmul %68, %123, %cst_37 {dimension_numbers = #tpu.dot_dimension_numbers<[1], [0], [0], [1], [0, 0, 1, 1], [], []>} : vector<8x108xbf16>, vector<108x256xbf16>, vector<8x256xf32> -> vector<8x256xf32>
    %125 = vector.broadcast %69 : vector<8x1xf32> to vector<8x256xf32>
    %126 = arith.addf %124, %125 : vector<8x256xf32>
    %cst_38 = arith.constant 0.000000e+00 : f32
    %127 = vector.broadcast %cst_38 : f32 to vector<8x256xf32>
    %128 = arith.maximumf %126, %127 : vector<8x256xf32>
    %c0_39 = arith.constant 0 : index
    %c0_40 = arith.constant 0 : index
    %c0_41 = arith.constant 0 : index
    %129 = vector.load %arg10[%c0_39, %c0_40, %c0_41] : memref<1x8x256xf32, #tpu.memory_space<vmem>>, vector<1x8x256xf32>
    %130 = vector.shape_cast %129 : vector<1x8x256xf32> to vector<8x256xf32>
    %131 = vector.shape_cast %128 : vector<8x256xf32> to vector<1x8x256xf32>
    tpu.vector_store %arg10[%c0_39, %c0_40, %c0_41], %131 {strides = array<i32>} : memref<1x8x256xf32, #tpu.memory_space<vmem>>, vector<1x8x256xf32>,
    return
  }
  func.func @transform_0(%arg0: i32) -> (i32, i32, i32) {
    %c0_i32 = arith.constant 0 : i32
    %c0_i32_0 = arith.constant 0 : i32
    %c0_i32_1 = arith.constant 0 : i32
    return %arg0, %c0_i32, %c0_i32_0 : i32, i32, i32
  }
  func.func @transform_1(%arg0: i32) -> (i32, i32, i32) {
    %c0_i32 = arith.constant 0 : i32
    %c0_i32_0 = arith.constant 0 : i32
    %c0_i32_1 = arith.constant 0 : i32
    return %arg0, %c0_i32, %c0_i32_0 : i32, i32, i32
  }
  func.func @transform_2(%arg0: i32) -> (i32, i32) {
    %c0_i32 = arith.constant 0 : i32
    %c0_i32_0 = arith.constant 0 : i32
    %c0_i32_1 = arith.constant 0 : i32
    return %c0_i32, %c0_i32_0 : i32, i32
  }
  func.func @transform_3(%arg0: i32) -> (i32, i32) {
    %c0_i32 = arith.constant 0 : i32
    %c0_i32_0 = arith.constant 0 : i32
    %c0_i32_1 = arith.constant 0 : i32
    return %c0_i32, %c0_i32_0 : i32, i32
  }
  func.func @transform_4(%arg0: i32) -> (i32, i32) {
    %c0_i32 = arith.constant 0 : i32
    %c0_i32_0 = arith.constant 0 : i32
    %c0_i32_1 = arith.constant 0 : i32
    return %c0_i32, %c0_i32_0 : i32, i32
  }
  func.func @transform_5(%arg0: i32) -> (i32, i32) {
    %c0_i32 = arith.constant 0 : i32
    %c0_i32_0 = arith.constant 0 : i32
    %c0_i32_1 = arith.constant 0 : i32
    return %c0_i32, %c0_i32_0 : i32, i32
  }
  func.func @transform_6(%arg0: i32) -> (i32, i32) {
    %c0_i32 = arith.constant 0 : i32
    %c0_i32_0 = arith.constant 0 : i32
    %c0_i32_1 = arith.constant 0 : i32
    return %c0_i32, %c0_i32_0 : i32, i32
  }
  func.func @transform_7(%arg0: i32) -> (i32, i32) {
    %c0_i32 = arith.constant 0 : i32
    %c0_i32_0 = arith.constant 0 : i32
    %c0_i32_1 = arith.constant 0 : i32
    return %c0_i32, %c0_i32_0 : i32, i32
  }
  func.func @transform_8(%arg0: i32) -> (i32, i32) {
    %c0_i32 = arith.constant 0 : i32
    %c0_i32_0 = arith.constant 0 : i32
    %c0_i32_1 = arith.constant 0 : i32
    return %c0_i32, %c0_i32_0 : i32, i32
  }
  func.func @transform_9(%arg0: i32) -> (i32, i32, i32) {
    %c0_i32 = arith.constant 0 : i32
    %c0_i32_0 = arith.constant 0 : i32
    %c0_i32_1 = arith.constant 0 : i32
    return %arg0, %c0_i32, %c0_i32_0 : i32, i32, i32
  }
}

</mosaic_0001>

<bundles_post_ra>
// kernel: label_combination_forward.1
= control target key start
LH: loop header
LB: loop body
LE: loop exit
PB: predicated region body
PF: predicated region fallthrough
CT: control target
= control target key end

     0   :  { %s1221_s30 = smov 0   ;;  %s1606_s0 = inlined_call_operand.vmem [shape: f32[2,3,64], index: 0, kind: input, shape index: {}]   ;;  %s1607_s1 = inlined_call_operand.vmem [shape: f32[2,4,256], index: 1, kind: input, shape index: {}]   ;;  %s1608_s2 = inlined_call_operand.vmem [shape: bf16[8,27], index: 2, kind: input, shape index: {}]   ;;  %s1609_s3 = inlined_call_operand.vmem [shape: f32[8,1], index: 3, kind: input, shape index: {}]   ;;  %s1610_s4 = inlined_call_operand.vmem [shape: bf16[8,108], index: 4, kind: input, shape index: {}]   ;;  %s1611_s5 = inlined_call_operand.vmem [shape: f32[8,1], index: 5, kind: input, shape index: {}]   ;;  %s1612_s6 = inlined_call_operand.vmem [shape: f32[9,64], index: 6, kind: input, shape index: {}]   ;;  %s1613_s7 = inlined_call_operand.vmem [shape: f32[9,256], index: 7, kind: input, shape index: {}]   ;;  %s1614_s8 = inlined_call_operand.vmem [shape: f32[64,256], index: 8, kind: input, shape index: {}]   ;;  %s1615_s9 = inlined_call_operand.vmem [shape: f32[2,8,256], index: 9, kind: output, shape index: {}]  }
   0x1 LB: > { %s1085_s10 = sadd.s32 4294967295, %s1151_s30   ;;  %p1089_p0 = scmp.ge.s32.totalorder %s1151_s30, 1  ;;  %s1151_s30 = sphi %s1221_s30, %s19_s30  }
   0x2   : > { %p296_p1 = scmp.lt.s32.totalorder %s1151_s30, 3 }
   0x4   : > { %p297_p2 = pnand %p1089_p0, %p296_p1 }
   0x5   : > { %p336_p3 = scmp.lt.s32.totalorder (!%p297_p2), %s1085_s10, 1  ;;  %s1153_s15 = smov (!%p297_p2), 120  }
   0x6   : > { %300 = sbr.rel (%p297_p2) target bundleno = 908 (0x38c), region = 56  ;;  %s1154_s16 = smov (!%p297_p2), 127  }
   0x7   : > { %s1156_s17 = smov (!%p297_p2), 119   ;;  %s1157_s18 = smov (!%p297_p2), 121  }
   0x8   : > { %s1158_s19 = smov (!%p297_p2), 1   ;;  %s1159_s20 = smov (!%p297_p2), 7  }
   0x9   : > { %s1161_s21 = smov (!%p297_p2), 8   ;;  %s1162_s22 = smov (!%p297_p2), 9  }
   0xb   : > { %s1617_s10 = smov (!%p336_p3, %s1085_s10), 1  ;;  %v1155_v1 = vmov 0.0   ;;  %vm1160_vm0 = vmmov 0   ;;  %v1163_v2 = vmov 0   ;;  %v354_v3 = vld [vmem:[%s1609_s3] sm:$0xff]  ;;  %v363_v4 = vlaneseq }
   0xc   : > { %s1090_s11 = sshll.u32 %s1617_s10, 2  ;;  %1109 = vmatprep.subr.bf16.mxu1 %v1155_v1  ;;  %1113 = vmatprep.mubr.msk.bf16.mxu1 %vm1160_vm0, %v1155_v1  ;;  %v1257_v7 = vld [vmem:[%s1612_s6] sm:$0xff]  ;;  %vm406_vm1 = vcmask 515072   ;;  %vm426_vm2 = vcmask 457728   ;;  %vm416_vm3 = vcmask 465920   ;;  %vm436_vm4 = vcmask 449536  }
   0xd   : > { %s339_s14 = scalar_lea.vmem %s1606_s0, %s1090_s11  ;;  %1143 = vset.pattern.permute.xlu0 %v1163_v2  ;;  %1005 = vmatprep.mubr.bf16.mxu0 %v1163_v2  ;;  %v364_v5 = vshrl.u32 %v363_v4, 7  ;;  %vm474_vm5 = vcmask 1041408   ;;  %vm391_vm6 = vcmask 7168   ;;  %vm381_vm7 = vcmask 56320   ;;  %v1095_v31 = vld [vmem:[%s1612_s6 + $0x8] ss:$0 sm:$0xff] }
   0xe   : > { %v1235_v0 = vld [vmem:[%s339_s14] sm:$0x7]  ;;  %vm476_vm8 = vcmask 1044480   ;;  %vm371_vm9 = vcmask 64512   ;;  %vm361_vm10 = vcmask 72704   ;;  %vm466_vm11 = vcmask 1045504  }
   0xf   : > { %423 = vrot.lane.b32.xlu1 %v1235_v0, %s1153_s15  ;;  %403 = vrot.lane.b32.xlu0 %v1235_v0, %s1154_s16  ;;  %v1252_v6 = vsub.s32 5, %v364_v5  ;;  %v1259_v8 = vsub.s32 7, %v364_v5  ;;  %v1261_v9 = vsub.s32 6, %v364_v5  ;;  %v1265_v13 = vsub.s32 4, %v364_v5  ;;  %s1165_s14 = smov 111   ;;  %s1166_s15 = smov 113  }
  0x10   : > { %v1271_v18 = vsub.s32 3, %v364_v5  ;;  %v1273_v19 = vsub.s32 2, %v364_v5  ;;  %v1275_v20 = vsub.s32 1, %v364_v5  ;;  %v1280_v27 = vsub.s32 0, %v364_v5  ;;  %s1105_s13 = sshll.u32 %s1617_s10, 4 }
  0x11   : > { %v411_v11 = vrot.slane %v1257_v7, %v1252_v6  ;;  %v431_v14 = vrot.slane %v1257_v7, %v1259_v8  ;;  %v421_v17 = vrot.slane %v1257_v7, %v1261_v9  ;;  %v401_v24 = vrot.slane %v1257_v7, %v1265_v13 }
  0x12   : > { %v396_v29 = vrot.slane %v1257_v7, %v1271_v18  ;;  %v386_v30 = vrot.slane %v1257_v7, %v1273_v19  ;;  %v376_v33 = vrot.slane %v1257_v7, %v1275_v20  ;;  %v1164_v38 = vmov 65535  }
  0x13   : > { %433 = vrot.lane.b32.xlu1 %v1235_v0, %s1156_s17  ;;  %413 = vrot.lane.b32.xlu0 %v1235_v0, %s1157_s18  ;;  %v489_v39 = vsel %vm476_vm8, 4294967295, %v1164_v38  ;;  %v402_v40 = vmul.f32 %v401_v24, %v1235_v0  ;;  %v366_v44 = vrot.slane %v1257_v7, %v1280_v27  ;;  %vm468_vm12 = vcmask 1040384   ;;  %v550_v7 = vld [vmem:[%s1614_s8 + $0x78] sm:$0xff]  ;;  %s1104_s18 = sshll.u32 %s1617_s10, 3  ;;  %v539_v24 = vld [vmem:[%s1614_s8 + $0x20] sm:$0xff]  ;;  %s1167_s17 = smov 112  }
  0x14   : > { %v490_v50 = vsel %vm466_vm11, %v489_v39, 0  ;;  %vm470_vm13 = vcmask 1043456   ;;  %vm464_vm14 = vcmask 1042432   ;;  %vm472_vm15 = vcmask 1046528   ;;  %s344_s24 = scalar_lea.vmem %s1607_s1, %s1104_s18  ;;  %s1168_s18 = smov 15  }
  0x15   : > { %v453_v56 = vrot.slane %v402_v40, 4  ;;  %vm485_vm0 = vcmask 220160  }
  0x17   : > { %388 = vrot.lane.b32.xlu1 %v1235_v0, %s1158_s19  ;;  %378 = vrot.lane.b32.xlu0 %v1235_v0, %s1159_s20  ;;  %s1169_s20 = smov 16  }
  0x1b   : > { %368 = vrot.lane.b32.xlu0 %v1235_v0, %s1161_s21  ;;  %358 = vrot.lane.b32.xlu1 %v1235_v0, %s1162_s22  ;;  %s1170_s21 = smov 17  }
  0x1f   : > { %482 = vperm.xlu0 %1143, %v354_v3  }
  0x81   : > { %v424_v10 = vpop.permute.xlu1 %423  ;;  %v404_v12 = vpop.permute.xlu0 %403 }
  0x82   : > { %v407_v15 = vsel %vm406_vm1, %v404_v12, 0.0  ;;  %v427_v16 = vsel %vm426_vm2, %v424_v10, 0.0  ;;  %v353_v10 = vld [vmem:[%s1608_s2] sm:$0xf]  ;;  %v548_v12 = vld [vmem:[%s1614_s8 + $0x68] sm:$0xff]  ;;  %vm551_vm1 = vcmask 523264  }
  0x83   : > { %v412_v21 = vmul.f32 %v411_v11, %v407_v15  ;;  %v432_v25 = vmul.f32 %v431_v14, %v427_v16  ;;  %v549_v11 = vld [vmem:[%s1614_s8 + $0x70] sm:$0xff]  ;;  %v547_v14 = vld [vmem:[%s1614_s8 + $0x60] sm:$0xff]  ;;  %v546_v15 = vld [vmem:[%s1614_s8 + $0x58] sm:$0xff]  ;;  %vm859_vm2 = vcmask 908288  }
  0x84   : > { %v545_v16 = vld [vmem:[%s1614_s8 + $0x50] sm:$0xff] }
  0x85   : > { %v434_v22 = vpop.permute.xlu1 %433  ;;  %v414_v23 = vpop.permute.xlu0 %413  ;;  %v456_v34 = vrot.slane %v412_v21, 1  ;;  %v462_v41 = vrot.slane %v432_v25, 3  ;;  %v543_v21 = vld [vmem:[%s1614_s8 + $0x40] sm:$0xff]  ;;  %v538_v25 = vld [vmem:[%s1614_s8 + $0x18] sm:$0xff] }
  0x86   : > { %v417_v26 = vsel %vm416_vm3, %v414_v23, 0.0  ;;  %v437_v32 = vsel %vm436_vm4, %v434_v22, 0.0  ;;  %v541_v22 = vld [vmem:[%s1614_s8 + $0x30] sm:$0xff]  ;;  %v540_v23 = vld [vmem:[%s1614_s8 + $0x28] sm:$0xff]  ;;  %vm830_vm3 = vcmask 916480   ;;  %vm772_vm4 = vcmask 1039360  }
  0x87   : > { %v422_v28 = vmul.f32 %v421_v17, %v417_v26  ;;  %v442_v45 = vmul.f32 %v1095_v31, %v437_v32  ;;  %v544_v17 = vld [vmem:[%s1614_s8 + $0x48] sm:$0xff]  ;;  %v537_v26 = vld [vmem:[%s1614_s8 + $0x10] sm:$0xff] }
  0x89   : > { %v459_v35 = vrot.slane %v422_v28, 6  ;;  %v389_v36 = vpop.permute.xlu1 %388  ;;  %v379_v37 = vpop.permute.xlu0 %378  ;;  %v536_v28 = vld [vmem:[%s1614_s8 + $0x8] sm:$0xff] }
  0x8a   : > { %v392_v42 = vsel %vm391_vm6, 0.0, %v389_v36  ;;  %v382_v43 = vsel %vm381_vm7, 0.0, %v379_v37  ;;  %vm703_vm7 = vcmask 121856  }
  0x8b   : > { %v475_v46 = vsel %vm474_vm5, %v456_v34, %v459_v35  ;;  %v397_v47 = vmul.f32 %v396_v29, %v392_v42  ;;  %v387_v48 = vmul.f32 %v386_v30, %v382_v43  ;;  %v1359_v29 = vld [vmem:[%s344_s24] sm:$0xff]  ;;  %vm801_vm5 = vcmask 924672  }
  0x8c   : > { %v477_v49 = vsel %vm476_vm8, %v475_v46, %v462_v41  ;;  %v535_v30 = vld [vmem:[%s1614_s8] sm:$0xff]  ;;  %v1366_v31 = vcombine.high %v1359_v29, %v1359_v29  ;;  %855 = vrot.lane.b32.xlu0 %v1359_v29, %s1165_s14  ;;  %vm674_vm8 = vcmask 130048  }
  0x8d   : > { %v450_v51 = vrot.slane %v397_v47, 7  ;;  %v447_v52 = vrot.slane %v387_v48, 2  ;;  %v369_v53 = vpop.permute.xlu0 %368  ;;  %v359_v54 = vpop.permute.xlu1 %358  ;;  %v479_v55 = vpack.c.bf16 %v442_v45, %v477_v49  ;;  %v630_v41 = vld [vmem:[%s1611_s5] sm:$0xff] }
  0x8e   : > { %v372_v57 = vsel %vm371_vm9, 0.0, %v369_v53  ;;  %v362_v58 = vsel %vm361_vm10, 0.0, %v359_v54  ;;  %857 = vrot.lane.b32.xlu1 %v1366_v31, %s1165_s14  ;;  %vm963_vm9 = vcmask 883712  }
  0x8f   : > { %v469_v59 = vsel %vm468_vm12, %v447_v52, %v450_v51  ;;  %v377_v60 = vmul.f32 %v376_v33, %v372_v57  ;;  %v367_v61 = vmul.f32 %v366_v44, %v362_v58  ;;  %v492_v62 = vand.u32 %v490_v50, %v479_v55 }
  0x90   : > { %v471_v0 = vsel %vm470_vm13, %v469_v59, %v453_v56  ;;  %799 = vrot.lane.b32.xlu0 %v1366_v31, %s1166_s15  ;;  %v1438_v56 = vld [vmem:[%s1613_s7] sm:$0xff]  ;;  %v1099_v59 = vld [vmem:[%s1613_s7 + $0x18] ss:$0 sm:$0xff] }
  0x91   : > { %v444_v63 = vrot.slane %v377_v60, 5  ;;  %1110 = vmatpush3.bf16.msra.mxu1 %v492_v62  ;;  %v473_v4 = vsel %vm472_vm15, %v471_v0, %v456_v34  ;;  %v1459_v0 = vrot.slane %v1438_v56, %v1265_v13 }
  0x92   : > { %1111 = vmatprep.subr.bf16.mxu1 %v1155_v1  ;;  %828 = vrot.lane.b32.xlu1 %v1366_v31, %s1167_s17 }
  0x93   : > { %v465_v2 = vsel %vm464_vm14, %v367_v61, %v444_v63  ;;  %v1098_v61 = vld [vmem:[%s1613_s7 + $0x10] ss:$0 sm:$0xff]  ;;  %v1455_v63 = vld [vmem:[%s1613_s7 + $0x8] sm:$0xff] }
  0x94   : > { %v467_v3 = vsel %vm466_vm11, %v465_v2, %v447_v52  ;;  %728 = vrot.lane.b32.xlu0 %v1359_v29, %s1158_s19  ;;  %v846_v2 = vrot.slane %v1455_v63, %v1259_v8 }
  0x95   : > { %v478_v5 = vpack.c.bf16 %v473_v4, %v467_v3  ;;  %v842_v3 = vrot.slane %v1438_v56, %v1259_v8  ;;  %v1467_v4 = vrot.slane %v1455_v63, %v1252_v6 }
  0x96   : > { %826 = vrot.lane.b32.xlu1 %v1359_v29, %s1167_s17 }
  0x97   : > { %1112 = vmatpush3.bf16.msra.mxu1 %v478_v5 }
  0x98   : > { %571 = vmatprep.subr.mxu1 %v550_v7  ;;  %699 = vrot.lane.b32.xlu0 %v1359_v29, %s1168_s18 }
  0x9a   : > { %1114 = vmatmul.mubr.msk.bf16.vlgmr.msra.gmra.mxu1 %vm485_vm0, %v353_v10  ;;  %797 = vrot.lane.b32.xlu1 %v1359_v29, %s1166_s15  ;;  %v483_v32 = vpop.permute.xlu0 %482 }
  0x9b   : > { %572 = vmatpush1.msra.mxu1 %v549_v11  ;;  %619 = vmatprep.mubr.f32.mxu1 %v1155_v1  ;;  %v542_v1 = vld [vmem:[%s1614_s8 + $0x38] sm:$0xff]  ;;  %v1472_v11 = vrot.slane %v1438_v56, %v1252_v6 }
  0x9c   : > { %573 = vmatprep.subr.mxu1 %v548_v12 }
  0x9d   : > { %574 = vmatpush1.msra.mxu1 %v547_v14 }
  0x9e   : > { %575 = vmatprep.subr.mxu1 %v546_v15  ;;  %770 = vrot.lane.b32.xlu1 %v1366_v31, %s1154_s16  ;;  %v1476_v15 = vrot.slane %v1438_v56, %v1271_v18 }
  0x9f   : > { %576 = vmatpush1.msra.mxu1 %v545_v16 }
  0xa0   : > { %577 = vmatprep.subr.mxu1 %v544_v17 }
  0xa1   : > { %578 = vmatpush1.msra.mxu1 %v543_v21 }
  0xa2   : > { %579 = vmatprep.subr.mxu1 %v542_v1  ;;  %768 = vrot.lane.b32.xlu1 %v1359_v29, %s1154_s16 }
  0xa3   : > { %580 = vmatpush1.msra.mxu1 %v541_v22 }
  0xa4   : > { %581 = vmatprep.subr.mxu1 %v540_v23 }
  0xa5   : > { %582 = vmatpush1.msra.mxu1 %v539_v24  ;;  %v1485_v24 = vrot.slane %v1455_v63, %v1261_v9 }
  0xa6   : > { %583 = vmatprep.subr.mxu1 %v538_v25  ;;  %730 = vrot.lane.b32.xlu1 %v1366_v31, %s1158_s19  ;;  %v747_v25 = vrot.slane %v1455_v63, %v1271_v18  ;;  %v813_v18 = vrot.slane %v1438_v56, %v1261_v9 }
  0xa7   : > { %584 = vmatpush1.msra.mxu1 %v537_v26 }
  0xa8   : > { %585 = vmatprep.subr.mxu1 %v536_v28 }
  0xa9   : > { %586 = vmatpush1.msra.mxu1 %v535_v30 }
  0xaa   : > { %701 = vrot.lane.b32.xlu1 %v1366_v31, %s1168_s18 }
  0xfe   : > { %v856_v47 = vpop.permute.xlu0 %855 }
 0x100   : > { %v858_v42 = vpop.permute.xlu1 %857 }
 0x101   : > { %v867_v60 = vsel %vm859_vm2, %v858_v42, 0.0  ;;  %v861_v62 = vsel %vm859_vm2, %v856_v47, %v858_v42  ;;  %v1509_v42 = vrot.slane %v1455_v63, %v1265_v13 }
 0x102   : > { %v800_v49 = vpop.permute.xlu0 %799  ;;  %v879_v5 = vmul.f32 %v1099_v59, %v867_v60  ;;  %v878_v10 = vmul.f32 %v1098_v61, %v861_v62 }
 0x104   : > { %v829_v43 = vpop.permute.xlu1 %828 }
 0x105   : > { %v838_v7 = vsel %vm830_vm3, %v829_v43, 0.0 }
 0x106   : > { %v729_v51 = vpop.permute.xlu0 %728  ;;  %v850_v23 = vmul.f32 %v846_v2, %v838_v7 }
 0x107   : > { %v739_v21 = vsel %vm391_vm6, 0.0, %v729_v51 }
 0x108   : > { %v827_v44 = vpop.permute.xlu1 %826  ;;  %v930_v9 = vrot.slane %v850_v23, 4 }
 0x109   : > { %v832_v17 = vsel %vm830_vm3, %v827_v44, %v829_v43 }
 0x10a   : > { %v1431_v53 = vpop.permute.xlu0 %699 }
 0x10b   : > { %v711_v62 = vsel %vm703_vm7, 0.0, %v1431_v53 }
 0x10c   : > { %v798_v45 = vpop.permute.xlu1 %797 }
 0x110   : > { %v771_v46 = vpop.permute.xlu1 %770 }
 0x111   : > { %v780_v6 = vsel %vm772_vm4, %v771_v46, 0.0 }
 0x112   : > { %v792_v43 = vmul.f32 %v1467_v4, %v780_v6 }
 0x114   : > { %v769_v48 = vpop.permute.xlu1 %768  ;;  %v916_v7 = vrot.slane %v792_v43, 4 }
 0x115   : > { %v774_v26 = vsel %vm772_vm4, %v769_v48, %v771_v46  ;;  %v803_v46 = vsel %vm801_vm5, %v798_v45, %v800_v49 }
 0x116   : > { %v791_v44 = vmul.f32 %v1472_v11, %v774_v26  ;;  %v763_v26 = vmul.f32 %v1509_v42, %v1366_v31 }
 0x118   : > { %v731_v50 = vpop.permute.xlu1 %730 }
 0x119   : > { %v733_v28 = vsel %vm391_vm6, %v729_v51, %v731_v50  ;;  %v1519_v50 = vrot.slane %v1438_v56, %v1273_v19 }
 0x11a   : > { %v1514_v47 = vmul.f32 %v747_v25, %v733_v28 }
 0x11c   : > { %v702_v52 = vpop.permute.xlu1 %701 }
 0x11d   : > { %v705_v13 = vsel %vm703_vm7, %v1431_v53, %v702_v52  ;;  %v902_v52 = vrot.slane %v1514_v47, 4 }
 0x15a   : > { %v528_v33 = vpop.f32.mrf.mxu1 }
 0x15b   : > { %v529_v34 = vadd.f32 %v528_v33, %v483_v32 }
 0x15c   : > { %v1115_v35 = vpop.f32.mrf.mxu1 }
 0x15d   : > { %v534_v36 = vmax.f32 %v529_v34, 0.0  ;;  %v849_v35 = vmul.f32 %v842_v3, %v832_v17 }
 0x15e   : > { %v531_v37 = vpop.f32.mrf.mxu1 }
 0x15f   : > { %1097 = vmatmul.mubr.msk.f32.vlgmr.msra.gmra.mxu1 %vm551_vm1, %v534_v36  ;;  %v809_v36 = vsel %vm801_vm5, %v800_v49, 0.0  ;;  %v1497_v37 = vmul.f32 %v1476_v15, %v739_v21 }
 0x160   : > { %v1116_v38 = vpop.f32.mrf.mxu1  ;;  %v821_v48 = vmul.f32 %v1485_v24, %v809_v36 }
 0x161   : > { %v1503_v38 = vrot.slane %v1455_v63, %v1273_v19  ;;  %v900_v60 = vrot.slane %v1497_v37, 4  ;;  %v661_v37 = vrot.slane %v1455_v63, %v1280_v27 }
 0x21f   : > { %v1392_v39 = vpop.f32.mrf.mxu1 }
 0x220   : > { %822 = vrot.lane.b32.xlu0 %v1392_v39, %s1167_s17  ;;  %851 = vrot.lane.b32.xlu1 %v1392_v39, %s1165_s14 }
 0x221   : > { %v1402_v40 = vpop.f32.mrf.mxu1 }
 0x224   : > { %764 = vrot.lane.b32.xlu0 %v1392_v39, %s1154_s16  ;;  %793 = vrot.lane.b32.xlu1 %v1392_v39, %s1166_s15 }
 0x228   : > { %724 = vrot.lane.b32.xlu0 %v1392_v39, %s1158_s19  ;;  %853 = vrot.lane.b32.xlu1 %v1402_v40, %s1165_s14 }
 0x22c   : > { %666 = vrot.lane.b32.xlu0 %v1392_v39, %s1169_s20  ;;  %672 = vrot.lane.b32.xlu1 %v1366_v31, %s1169_s20 }
 0x230   : > { %824 = vrot.lane.b32.xlu0 %v1402_v40, %s1167_s17  ;;  %643 = vrot.lane.b32.xlu1 %v1366_v31, %s1170_s21  ;;  %s349_s17 = scalar_lea.vmem %s1615_s9, %s1105_s13 }
 0x234   : > { %766 = vrot.lane.b32.xlu0 %v1402_v40, %s1154_s16  ;;  %726 = vrot.lane.b32.xlu1 %v1402_v40, %s1158_s19 }
 0x238   : > { %795 = vrot.lane.b32.xlu0 %v1402_v40, %s1166_s15  ;;  %668 = vrot.lane.b32.xlu1 %v1402_v40, %s1169_s20 }
 0x23c   : > { %670 = vrot.lane.b32.xlu0 %v1359_v29, %s1169_s20  ;;  %697 = vrot.lane.b32.xlu1 %v1402_v40, %s1168_s18 }
 0x240   : > { %695 = vrot.lane.b32.xlu0 %v1392_v39, %s1168_s18  ;;  %639 = vrot.lane.b32.xlu1 %v1402_v40, %s1170_s21 }
 0x244   : > { %641 = vrot.lane.b32.xlu0 %v1359_v29, %s1170_s21 }
 0x248   : > { %637 = vrot.lane.b32.xlu0 %v1392_v39, %s1170_s21 }
 0x24c   : > { %960 = vperm.xlu0 %1143, %v630_v41  }
 0x292   : > { %v1433_v54 = vpop.permute.xlu0 %822  ;;  %v852_v55 = vpop.permute.xlu1 %851 }
 0x296   : > { %v1440_v57 = vpop.permute.xlu0 %764  ;;  %v1442_v58 = vpop.permute.xlu1 %793 }
 0x29a   : > { %v725_v12 = vpop.permute.xlu0 %724  ;;  %v854_v14 = vpop.permute.xlu1 %853 }
 0x29b   : > { %v860_v8 = vsel %vm859_vm2, %v852_v55, %v854_v14  ;;  %v866_v16 = vsel %vm859_vm2, %v854_v14, 0.0  ;;  %v723_v14 = vmul.f32 %v1503_v38, %v705_v13 }
 0x29c   : > { %v876_v1 = vmul.f32 %v1098_v61, %v860_v8  ;;  %v877_v22 = vmul.f32 %v1099_v59, %v866_v16  ;;  %v928_v59 = vrot.slane %v849_v35, 4  ;;  %v820_v61 = vmul.f32 %v813_v18, %v803_v46 }
 0x29e   : > { %v1491_v30 = vpop.permute.xlu0 %666  ;;  %v1493_v32 = vpop.permute.xlu1 %672  ;;  %v957_v33 = vpack.c.bf16 %v879_v5, %v877_v22  ;;  %v956_v34 = vpack.c.bf16 %v878_v10, %v876_v1  ;;  %v914_v10 = vrot.slane %v791_v44, 4  ;;  %v738_v1 = vsel %vm391_vm6, 0.0, %v725_v12 }
 0x29f   : > { %v748_v35 = vmul.f32 %v1476_v15, %v738_v1 }
 0x2a0   : > { %1100 = vmatprep.subr.msk.bf16.mxu0 %vm466_vm11, %v957_v33  ;;  %v968_v41 = vsel %vm466_vm11, %v956_v34, 0 }
 0x2a1   : > { %976 = vmatpush1.bf16.msra.mxu0 %v968_v41 }
 0x2a2   : > { %v825_v51 = vpop.permute.xlu0 %824  ;;  %v1523_v55 = vpop.permute.xlu1 %643 }
 0x2a3   : > { %v831_v45 = vsel %vm830_vm3, %v1433_v54, %v825_v51  ;;  %v837_v49 = vsel %vm830_vm3, %v825_v51, 0.0  ;;  %v690_v54 = vrot.slane %v1455_v63, %v1275_v20 }
 0x2a4   : > { %v847_v19 = vmul.f32 %v842_v3, %v831_v45  ;;  %v848_v5 = vmul.f32 %v846_v2, %v837_v49  ;;  %v681_v49 = vsel %vm674_vm8, 0.0, %v1491_v30 }
 0x2a6   : > { %v926_v8 = vrot.slane %v847_v19, 4  ;;  %v927_v16 = vrot.slane %v848_v5, 4  ;;  %v767_v17 = vpop.permute.xlu0 %766  ;;  %v727_v21 = vpop.permute.xlu1 %726 }
 0x2a7   : > { %v773_v53 = vsel %vm772_vm4, %v1440_v57, %v767_v17  ;;  %v779_v2 = vsel %vm772_vm4, %v767_v17, 0.0  ;;  %v732_v3 = vsel %vm391_vm6, %v725_v12, %v727_v21  ;;  %vm645_vm6 = vcmask 138240  }
 0x2a8   : > { %v789_v22 = vmul.f32 %v1472_v11, %v773_v53  ;;  %v790_v23 = vmul.f32 %v1467_v4, %v779_v2  ;;  %v931_v6 = vsel %vm470_vm13, %v927_v16, %v930_v9  ;;  %v749_v28 = vmul.f32 %v747_v25, %v732_v3 }
 0x2a9   : > { %v943_v33 = vsel %vm470_vm13, %v821_v48, %v927_v16  ;;  %v929_v34 = vsel %vm470_vm13, %v926_v8, %v928_v59  ;;  %v942_v57 = vsel %vm470_vm13, %v820_v61, %v926_v8  ;;  %v762_v25 = vmul.f32 %v1459_v0, %v1359_v29 }
 0x2aa   : > { %v912_v36 = vrot.slane %v789_v22, 4  ;;  %v913_v12 = vrot.slane %v790_v23, 4  ;;  %v796_v41 = vpop.permute.xlu0 %795  ;;  %v669_v11 = vpop.permute.xlu1 %668  ;;  %v955_v43 = vpack.c.bf16 %v931_v6, %v943_v33  ;;  %v954_v31 = vpack.c.bf16 %v929_v34, %v942_v57 }
 0x2ab   : > { %v802_v4 = vsel %vm801_vm5, %v1442_v58, %v796_v41  ;;  %v808_v44 = vsel %vm801_vm5, %v796_v41, 0.0  ;;  %v675_v15 = vsel %vm674_vm8, %v1491_v30, %v669_v11  ;;  %v686_v48 = vrot.slane %v1438_v56, %v1275_v20 }
 0x2ac   : > { %v818_v46 = vmul.f32 %v813_v18, %v802_v4  ;;  %v819_v47 = vmul.f32 %v1485_v24, %v808_v44  ;;  %977 = vmatprep.subr.bf16.mxu0 %v955_v43  ;;  %v917_v9 = vsel %vm470_vm13, %v913_v12, %v916_v7  ;;  %v899_v13 = vrot.slane %v749_v28, 4 }
 0x2ad   : > { %978 = vmatpush1.bf16.msra.mxu0 %v954_v31  ;;  %v915_v58 = vsel %vm470_vm13, %v912_v36, %v914_v10  ;;  %v941_v51 = vsel %vm470_vm13, %v763_v26, %v913_v12  ;;  %v898_v59 = vrot.slane %v748_v35, 4  ;;  %v761_v24 = vmul.f32 %v1509_v42, %v1402_v40  ;;  %v629_v31 = vld [vmem:[%s1610_s4] sm:$0xf] }
 0x2ae   : > { %v671_v29 = vpop.permute.xlu0 %670  ;;  %v953_v18 = vpack.c.bf16 %v819_v47, %v917_v9  ;;  %v952_v45 = vpack.c.bf16 %v818_v46, %v915_v58  ;;  %v692_v61 = vmul.f32 %v690_v54, %v675_v15  ;;  %v940_v8 = vsel %vm470_vm13, %v762_v25, %v912_v36  ;;  %v698_v21 = vpop.permute.xlu1 %697 }
 0x2af   : > { %v676_v20 = vsel %vm674_vm8, %v671_v29, %v1493_v32  ;;  %v682_v19 = vsel %vm674_vm8, 0.0, %v671_v29  ;;  %v951_v10 = vpack.c.bf16 %v941_v51, %v761_v24  ;;  %v722_v16 = vmul.f32 %v1519_v50, %v711_v62 }
 0x2b0   : > { %v693_v5 = vmul.f32 %v686_v48, %v682_v19  ;;  %v694_v7 = vmul.f32 %v690_v54, %v676_v20  ;;  %979 = vmatprep.subr.bf16.mxu0 %v953_v18  ;;  %v760_v40 = vmul.f32 %v1459_v0, %v1392_v39  ;;  %v903_v30 = vsel %vm470_vm13, %v899_v13, %v902_v52 }
 0x2b1   : > { %980 = vmatpush1.bf16.msra.mxu0 %v952_v45  ;;  %v939_v42 = vsel %vm470_vm13, %v723_v14, %v899_v13  ;;  %v691_v17 = vmul.f32 %v686_v48, %v681_v49  ;;  %v901_v54 = vsel %vm470_vm13, %v898_v59, %v900_v60  ;;  %v885_v53 = vrot.slane %v692_v61, 4 }
 0x2b2   : > { %v888_v32 = vrot.slane %v694_v7, 4  ;;  %v696_v1 = vpop.permute.xlu0 %695  ;;  %981 = vmatprep.subr.bf16.mxu0 %v951_v10  ;;  %v950_v2 = vpack.c.bf16 %v940_v8, %v760_v40  ;;  %v938_v39 = vsel %vm470_vm13, %v722_v16, %v898_v59  ;;  %v886_v0 = vrot.slane %v693_v5, 4 }
 0x2b3   : > { %v704_v62 = vsel %vm703_vm7, %v696_v1, %v698_v21  ;;  %v710_v52 = vsel %vm703_vm7, 0.0, %v696_v1  ;;  %v949_v3 = vpack.c.bf16 %v903_v30, %v939_v42  ;;  %v657_v22 = vrot.slane %v1438_v56, %v1280_v27  ;;  %v640_v27 = vpop.permute.xlu1 %639 }
 0x2b4   : > { %v721_v14 = vmul.f32 %v1503_v38, %v704_v62  ;;  %v889_v60 = vsel %vm470_vm13, %v885_v53, %v888_v32  ;;  %v884_v23 = vrot.slane %v691_v17, 4  ;;  %v720_v26 = vmul.f32 %v1519_v50, %v710_v52 }
 0x2b5   : > { %982 = vmatpush1.bf16.msra.mxu0 %v950_v2  ;;  %v948_v33 = vpack.c.bf16 %v901_v54, %v938_v39 }
 0x2b6   : > { %v642_v6 = vpop.permute.xlu0 %641  ;;  %983 = vmatprep.subr.bf16.mxu0 %v949_v3  ;;  %v947_v34 = vpack.c.bf16 %v721_v14, %v889_v60  ;;  %v887_v57 = vsel %vm470_vm13, %v884_v23, %v886_v0 }
 0x2b7   : > { %v647_v28 = vsel %vm645_vm6, %v642_v6, %v1523_v55  ;;  %v653_v38 = vsel %vm645_vm6, 0.0, %v642_v6  ;;  %v946_v12 = vpack.c.bf16 %v720_v26, %v887_v57 }
 0x2b8   : > { %v664_v56 = vmul.f32 %v657_v22, %v653_v38  ;;  %v665_v35 = vmul.f32 %v661_v37, %v647_v28 }
 0x2b9   : > { %984 = vmatpush1.bf16.msra.mxu0 %v948_v33 }
 0x2ba   : > { %v638_v63 = vpop.permute.xlu0 %637  ;;  %985 = vmatprep.subr.bf16.mxu0 %v947_v34  ;;  %v937_v11 = vsel %vm470_vm13, %v665_v35, %v885_v53  ;;  %v936_v43 = vsel %vm470_vm13, %v664_v56, %v884_v23 }
 0x2bb   : > { %v646_v36 = vsel %vm645_vm6, %v638_v63, %v640_v27  ;;  %v652_v50 = vsel %vm645_vm6, 0.0, %v638_v63 }
 0x2bc   : > { %v662_v41 = vmul.f32 %v657_v22, %v652_v50  ;;  %v663_v55 = vmul.f32 %v661_v37, %v646_v36 }
 0x2bd   : > { %986 = vmatpush1.bf16.msra.mxu0 %v946_v12 }
 0x2be   : > { %v945_v4 = vpack.c.bf16 %v937_v11, %v663_v55  ;;  %v944_v44 = vpack.c.bf16 %v936_v43, %v662_v41 }
 0x2c0   : > { %987 = vmatprep.subr.bf16.mxu0 %v945_v4 }
 0x2c1   : > { %988 = vmatpush1.bf16.msra.mxu0 %v944_v44 }
 0x2c4   : > { %1101 = vmatmul.mubr.msk.bf16.vlgmr.msra.gmra.mxu0 %vm963_vm9, %v629_v31 }
 0x2c7   : > { %v961_v25 = vpop.permute.xlu0 %960 }
 0x384   : > { %v1007_v46 = vpop.f32.mrf.mxu0 }
 0x385   : > { %v1008_v47 = vadd.f32 %v1007_v46, %v961_v25 }
 0x386   : > { %v1009_v15 = vpop.f32.mrf.mxu0 }
 0x387   : > { %v1014_v9 = vmax.f32 %v1008_v47, 0.0  ;;  %v1010_v48 = vadd.f32 %v1009_v15, %v961_v25 }
 0x388   : > { %v1011_v13 = vpop.f32.mrf.mxu0 }
 0x389   : > { %1016 = vst [vmem:[%s349_s17] sm:$0xff] %v1014_v9  ;;  %v1015_v58 = vmax.f32 %v1010_v48, 0.0 }
 0x38a   : > { %v1012_v51 = vpop.f32.mrf.mxu0 }
 0x38b   : > { %1017 = vst [vmem:[%s349_s17 + $0x8] sm:$0xff] %v1015_v58 }
 0x38c PF: > { %s19_s30 = sadd.s32 1, %s1151_s30  }
 0x38d   : > { %p16_p4 = scmp.ge.s32.totalorder %s19_s30, 4  }
 0x38f   :  { %18 = sbr.rel (!%p16_p4) target bundleno = 1 (0x1), region = 89 }

</bundles_post_ra>
